<compile_context>
chip_gen: v6e
topology: v6e:2x2x1
jax: 0.10.0
libtpu: 0.0.40
codegen_flags: <defaults>
</compile_context>

<pallas_src>
import numpy as np
import jax
import jax.numpy as jnp
from jax import lax
from jax.experimental import pallas as pl
from jax.experimental.pallas import tpu as pltpu


_BLOCK_BUDGET_BYTES = 6 * 1024 * 1024   # target bytes for one x block (2x-buffered)
_VMEM_LIMIT_BYTES = 48 * 1024 * 1024    # safe on v5e/v6e (128 MiB) and v7x (64 MiB)


def _round_up(x, m):
    return (x + m - 1) // m * m


def _choose_tiles(n, c, hw, itemsize, budget=_BLOCK_BUDGET_BYTES):
    """Jointly pick (Nb, Ts) so one (Nb, C, Ts) x block is ~budget bytes.

    Ts is a multiple of 128 (lane-dense) unless HW <= 128, where it is the full
    extent.  Nb is a divisor of N, capped at N//2 when N >= 2 so the 'parallel'
    batch grid axis keeps >= 2 points (keeps both v7x TensorCores busy).
    The budget is enforced with the real dtype itemsize (bf16 gets 2x rows).
    """
    row_bytes = c * itemsize
    if hw <= 128:
        ts = hw                                           # full extent is allowed
    else:
        ts_budget = max(128, (budget // max(row_bytes, 1)) // 128 * 128)
        ts = min(_round_up(hw, 128), ts_budget)           # multiple of 128
    # Batch tile: enforce the budget at the chosen Ts.
    nb_budget = max(1, budget // max(row_bytes * ts, 1))
    nb_cap = n if n < 2 else max(1, n // 2)               # >= 2 parallel grid points
    nb_limit = max(1, min(nb_budget, nb_cap))
    nb = 1
    for d in range(1, nb_limit + 1):
        if n % d == 0:
            nb = d
    return nb, ts


def _make_kernel(hw, ts, needs_mask):
    inv_hw = 1.0 / float(hw)

    def kernel(x_ref, w1_ref, w2_ref, o_ref, sum_ref, max_ref):
        # x_ref  : (Nb, C, Ts) block of x (lane-dense spatial axis)
        # w1_ref : (C, Crp)  first 1x1-conv weight, transposed + zero-padded
        # w2_ref : (Crp, C)  second 1x1-conv weight, transposed + zero-padded
        # o_ref  : (Nb, 1, C) attention weights (written on last spatial step)
        # sum_ref/max_ref : (Nb, C) f32 running channel sum / max
        s = pl.program_id(1)
        ns = pl.num_programs(1)

        xb = x_ref[...]                                   # native dtype block
        if needs_mask:
            valid = hw - s * ts                           # remaining real elements
            lane = lax.broadcasted_iota(jnp.int32, xb.shape, 2)
            m = lane < valid
            x_for_sum = jnp.where(m, xb, jnp.zeros_like(xb))
            x_for_max = jnp.where(m, xb, jnp.full_like(xb, -jnp.inf))
        else:
            x_for_sum = xb
            x_for_max = xb

        part_sum = jnp.sum(x_for_sum, axis=2, dtype=jnp.float32)   # (Nb, C) f32
        part_max = jnp.max(x_for_max, axis=2).astype(jnp.float32)  # (Nb, C) f32

        @pl.when(s == 0)
        def _():
            sum_ref[...] = part_sum
            max_ref[...] = part_max

        @pl.when(s > 0)
        def _():
            sum_ref[...] = sum_ref[...] + part_sum
            max_ref[...] = jnp.maximum(max_ref[...], part_max)

        @pl.when(s == ns - 1)
        def _():
            avg_p = sum_ref[...] * inv_hw                 # (Nb, C)
            max_p = max_ref[...]                          # (Nb, C)
            nb = avg_p.shape[0]
            pooled = jnp.concatenate([avg_p, max_p], axis=0)   # (2*Nb, C)
            h = jnp.maximum(
                jnp.dot(pooled, w1_ref[...], preferred_element_type=jnp.float32),
                0.0)
            y = jnp.dot(h, w2_ref[...], preferred_element_type=jnp.float32)
            att = jax.nn.sigmoid(y[:nb, :] + y[nb:, :])   # (Nb, C)
            o_ref[:, 0, :] = att.astype(o_ref.dtype)

    return kernel


def cbam_channel_attention(x, w1, w2):
    """x: (N, C, H, W); w1: (C//rate, C); w2: (C, C//rate).  Returns (N, C, 1, 1)."""
    N, C, H, W = x.shape
    Cr = w1.shape[0]
    HW = H * W

    # Lane-dense view of x (last dim H*W instead of W).  Pure metadata reshape.
    x3 = x.reshape(N, C, HW)

    # Zero-pad the hidden dim to a lane-dense multiple of 128 (exact math).
    Crp = _round_up(Cr, 128)
    w1t = jnp.zeros((C, Crp), jnp.float32).at[:, :Cr].set(w1.T.astype(jnp.float32))
    w2t = jnp.zeros((Crp, C), jnp.float32).at[:Cr, :].set(w2.T.astype(jnp.float32))

    itemsize = jnp.dtype(x.dtype).itemsize
    Nb, Ts = _choose_tiles(N, C, HW, itemsize)
    needs_mask = (HW % Ts) != 0
    grid = (N // Nb, pl.cdiv(HW, Ts))

    out3 = pl.pallas_call(
        _make_kernel(HW, Ts, needs_mask),
        out_shape=jax.ShapeDtypeStruct((N, 1, C), x.dtype),
        grid_spec=pltpu.PrefetchScalarGridSpec(
            num_scalar_prefetch=0,
            grid=grid,
            in_specs=[
                pl.BlockSpec((Nb, C, Ts), lambda b, s: (b, 0, s)),
                pl.BlockSpec((C, Crp), lambda b, s: (0, 0)),
                pl.BlockSpec((Crp, C), lambda b, s: (0, 0)),
            ],
            out_specs=pl.BlockSpec((Nb, 1, C), lambda b, s: (b, 0, 0)),
            scratch_shapes=[
                pltpu.VMEM((Nb, C), jnp.float32),
                pltpu.VMEM((Nb, C), jnp.float32),
            ],
        ),
        compiler_params=pltpu.CompilerParams(
            dimension_semantics=("parallel", "arbitrary"),
            vmem_limit_bytes=_VMEM_LIMIT_BYTES,
        ),
    )(x3, w1t, w2t)

    return out3.reshape(N, C, 1, 1)


def _reference(x, w1, w2):
    """Pure-JAX reference mirroring the PyTorch CBAM_ChannelAttention.forward."""
    avg = jnp.mean(x, axis=(2, 3))                        # (N, C)
    mx = jnp.max(x, axis=(2, 3))                          # (N, C)

    def fc(p):
        h = jnp.maximum(p @ w1.T, 0.0)                    # (N, C//r)
        return h @ w2.T                                   # (N, C)

    out = jax.nn.sigmoid(fc(avg) + fc(mx))
    return out[:, :, None, None]                          # (N, C, 1, 1)


if __name__ == "__main__":
    key = jax.random.PRNGKey(0)
    kx, k1, k2 = jax.random.split(key, 3)

    N, C, H, W, rate = 2, 4, 16, 16, 4
    Cr = max(1, C // rate)
    x = jax.random.normal(kx, (N, C, H, W), dtype=jnp.float32)
    # Conv2d(C, C//r, 1, bias=False).weight -> (C//r, C); Conv2d(C//r, C, 1).weight -> (C, C//r)
    w1 = 0.3 * jax.random.normal(k1, (Cr, C), dtype=jnp.float32)
    w2 = 0.3 * jax.random.normal(k2, (C, Cr), dtype=jnp.float32)

    out = jax.block_until_ready(cbam_channel_attention(x, w1, w2))
    ref = jax.block_until_ready(_reference(x, w1, w2))
    np.testing.assert_allclose(np.asarray(out), np.asarray(ref), rtol=1e-5, atol=1e-5)

    print("KERNEL_OK")
</pallas_src>

<mosaic_0001>
module attributes {stable_mosaic.version = 11 : i64} {
  func.func @kernel(%arg0: i32, %arg1: i32, %arg2: memref<1x4x256xf32, #tpu.memory_space<vmem>>, %arg3: memref<4x128xf32, #tpu.memory_space<vmem>>, %arg4: memref<128x4xf32, #tpu.memory_space<vmem>>, %arg5: memref<1x1x4xf32, #tpu.memory_space<vmem>>, %arg6: memref<1x4xf32, #tpu.memory_space<vmem>>, %arg7: memref<1x4xf32, #tpu.memory_space<vmem>>) attributes {dimension_semantics = [#tpu.dimension_semantics<parallel>, #tpu.dimension_semantics<arbitrary>], iteration_bounds = array<i64: 2, 1>, scalar_prefetch = 0 : i64, scratch_operands = 2 : i64, tpu.core_type = #tpu.core_type<tc>, window_params = [{transform_indices = @transform_0, window_bounds = array<i64: 1, 4, 256>}, {pipeline_mode = #tpu.pipeline_mode<synchronous>, transform_indices = @transform_1, window_bounds = array<i64: 4, 128>}, {pipeline_mode = #tpu.pipeline_mode<synchronous>, transform_indices = @transform_2, window_bounds = array<i64: 128, 4>}, {transform_indices = @transform_3, window_bounds = array<i64: 1, 1, 4>}]} {
    %c0 = arith.constant 0 : index
    %c0_0 = arith.constant 0 : index
    %c0_1 = arith.constant 0 : index
    %0 = vector.load %arg2[%c0, %c0_0, %c0_1] : memref<1x4x256xf32, #tpu.memory_space<vmem>>, vector<1x4x256xf32>
    %cst = arith.constant dense<0.000000e+00> : vector<1x4xf32>
    %1 = vector.multi_reduction <add>, %0, %cst [2] : vector<1x4x256xf32> to vector<1x4xf32>
    %cst_2 = arith.constant dense<0xFF800000> : vector<1x4xf32>
    %2 = vector.multi_reduction <maximumf>, %0, %cst_2 [2] : vector<1x4x256xf32> to vector<1x4xf32>
    %c0_i32 = arith.constant 0 : i32
    %3 = arith.cmpi eq, %arg1, %c0_i32 : i32
    %4 = arith.extui %3 : i1 to i32
    %c0_i32_3 = arith.constant 0 : i32
    %5 = arith.cmpi ne, %4, %c0_i32_3 : i32
    scf.if %5 {
      %c0_8 = arith.constant 0 : index
      %c0_9 = arith.constant 0 : index
      %12 = vector.load %arg6[%c0_8, %c0_9] : memref<1x4xf32, #tpu.memory_space<vmem>>, vector<1x4xf32>
      tpu.vector_store %arg6[%c0_8, %c0_9], %1 {strides = array<i32>} : memref<1x4xf32, #tpu.memory_space<vmem>>, vector<1x4xf32>,
      %c0_10 = arith.constant 0 : index
      %c0_11 = arith.constant 0 : index
      %13 = vector.load %arg7[%c0_10, %c0_11] : memref<1x4xf32, #tpu.memory_space<vmem>>, vector<1x4xf32>
      tpu.vector_store %arg7[%c0_10, %c0_11], %2 {strides = array<i32>} : memref<1x4xf32, #tpu.memory_space<vmem>>, vector<1x4xf32>,
    } else {
    }
    %c0_i32_4 = arith.constant 0 : i32
    %6 = arith.cmpi sgt, %arg1, %c0_i32_4 : i32
    %7 = arith.extui %6 : i1 to i32
    %c0_i32_5 = arith.constant 0 : i32
    %8 = arith.cmpi ne, %7, %c0_i32_5 : i32
    scf.if %8 {
      %c0_8 = arith.constant 0 : index
      %c0_9 = arith.constant 0 : index
      %12 = vector.load %arg6[%c0_8, %c0_9] : memref<1x4xf32, #tpu.memory_space<vmem>>, vector<1x4xf32>
      %13 = arith.addf %12, %1 : vector<1x4xf32>
      %c0_10 = arith.constant 0 : index
      %c0_11 = arith.constant 0 : index
      %14 = vector.load %arg6[%c0_10, %c0_11] : memref<1x4xf32, #tpu.memory_space<vmem>>, vector<1x4xf32>
      tpu.vector_store %arg6[%c0_10, %c0_11], %13 {strides = array<i32>} : memref<1x4xf32, #tpu.memory_space<vmem>>, vector<1x4xf32>,
      %c0_12 = arith.constant 0 : index
      %c0_13 = arith.constant 0 : index
      %15 = vector.load %arg7[%c0_12, %c0_13] : memref<1x4xf32, #tpu.memory_space<vmem>>, vector<1x4xf32>
      %16 = arith.maximumf %15, %2 : vector<1x4xf32>
      %c0_14 = arith.constant 0 : index
      %c0_15 = arith.constant 0 : index
      %17 = vector.load %arg7[%c0_14, %c0_15] : memref<1x4xf32, #tpu.memory_space<vmem>>, vector<1x4xf32>
      tpu.vector_store %arg7[%c0_14, %c0_15], %16 {strides = array<i32>} : memref<1x4xf32, #tpu.memory_space<vmem>>, vector<1x4xf32>,
    } else {
    }
    %c0_i32_6 = arith.constant 0 : i32
    %9 = arith.cmpi eq, %arg1, %c0_i32_6 : i32
    %10 = arith.extui %9 : i1 to i32
    %c0_i32_7 = arith.constant 0 : i32
    %11 = arith.cmpi ne, %10, %c0_i32_7 : i32
    scf.if %11 {
      %c0_8 = arith.constant 0 : index
      %c0_9 = arith.constant 0 : index
      %12 = vector.load %arg6[%c0_8, %c0_9] : memref<1x4xf32, #tpu.memory_space<vmem>>, vector<1x4xf32>
      %cst_10 = arith.constant 3.906250e-03 : f32
      %13 = vector.broadcast %cst_10 : f32 to vector<1x4xf32>
      %14 = arith.mulf %12, %13 : vector<1x4xf32>
      %c0_11 = arith.constant 0 : index
      %c0_12 = arith.constant 0 : index
      %15 = vector.load %arg7[%c0_11, %c0_12] : memref<1x4xf32, #tpu.memory_space<vmem>>, vector<1x4xf32>
      %16 = tpu.concatenate %14, %15 in 0 : vector<1x4xf32>, vector<1x4xf32> -> vector<2x4xf32>
      %c0_13 = arith.constant 0 : index
      %c0_14 = arith.constant 0 : index
      %17 = vector.load %arg3[%c0_13, %c0_14] : memref<4x128xf32, #tpu.memory_space<vmem>>, vector<4x128xf32>
      %cst_15 = arith.constant dense<0.000000e+00> : vector<2x128xf32>
      %18 = tpu.matmul %16, %17, %cst_15 {dimension_numbers = #tpu.dot_dimension_numbers<[1], [0], [0], [1], [0, 0, 1, 1], [], []>} : vector<2x4xf32>, vector<4x128xf32>, vector<2x128xf32> -> vector<2x128xf32>
      %cst_16 = arith.constant 0.000000e+00 : f32
      %19 = vector.broadcast %cst_16 : f32 to vector<2x128xf32>
      %20 = arith.maximumf %18, %19 : vector<2x128xf32>
      %c0_17 = arith.constant 0 : index
      %c0_18 = arith.constant 0 : index
      %21 = vector.load %arg4[%c0_17, %c0_18] : memref<128x4xf32, #tpu.memory_space<vmem>>, vector<128x4xf32>
      %cst_19 = arith.constant dense<0.000000e+00> : vector<2x4xf32>
      %22 = tpu.matmul %20, %21, %cst_19 {dimension_numbers = #tpu.dot_dimension_numbers<[1], [0], [0], [1], [0, 0, 1, 1], [], []>} : vector<2x128xf32>, vector<128x4xf32>, vector<2x4xf32> -> vector<2x4xf32>
      %23 = vector.extract_strided_slice %22 {offsets = [0, 0], sizes = [1, 4], strides = [1, 1]} : vector<2x4xf32> to vector<1x4xf32>
      %24 = vector.extract_strided_slice %22 {offsets = [1, 0], sizes = [1, 4], strides = [1, 1]} : vector<2x4xf32> to vector<1x4xf32>
      %25 = arith.addf %23, %24 : vector<1x4xf32>
      %26 = arith.negf %25 : vector<1x4xf32>
      %27 = math.exp %26 : vector<1x4xf32>
      %cst_20 = arith.constant 1.000000e+00 : f32
      %28 = vector.broadcast %cst_20 : f32 to vector<1x4xf32>
      %29 = arith.addf %28, %27 : vector<1x4xf32>
      %30 = arith.divf %28, %29 : vector<1x4xf32>
      %c0_21 = arith.constant 0 : index
      %c0_22 = arith.constant 0 : index
      %c0_23 = arith.constant 0 : index
      %31 = vector.load %arg5[%c0_21, %c0_22, %c0_23] : memref<1x1x4xf32, #tpu.memory_space<vmem>>, vector<1x1x4xf32>
      %32 = vector.shape_cast %31 : vector<1x1x4xf32> to vector<1x4xf32>
      %33 = vector.shape_cast %30 : vector<1x4xf32> to vector<1x1x4xf32>
      tpu.vector_store %arg5[%c0_21, %c0_22, %c0_23], %33 {strides = array<i32>} : memref<1x1x4xf32, #tpu.memory_space<vmem>>, vector<1x1x4xf32>,
    } else {
    }
    return
  }
  func.func @transform_0(%arg0: i32, %arg1: i32) -> (i32, i32, i32) {
    %c0_i32 = arith.constant 0 : i32
    %c0_i32_0 = arith.constant 0 : i32
    return %arg0, %c0_i32, %arg1 : i32, i32, i32
  }
  func.func @transform_1(%arg0: i32, %arg1: i32) -> (i32, i32) {
    %c0_i32 = arith.constant 0 : i32
    %c0_i32_0 = arith.constant 0 : i32
    %c0_i32_1 = arith.constant 0 : i32
    return %c0_i32, %c0_i32_0 : i32, i32
  }
  func.func @transform_2(%arg0: i32, %arg1: i32) -> (i32, i32) {
    %c0_i32 = arith.constant 0 : i32
    %c0_i32_0 = arith.constant 0 : i32
    %c0_i32_1 = arith.constant 0 : i32
    return %c0_i32, %c0_i32_0 : i32, i32
  }
  func.func @transform_3(%arg0: i32, %arg1: i32) -> (i32, i32, i32) {
    %c0_i32 = arith.constant 0 : i32
    %c0_i32_0 = arith.constant 0 : i32
    %c0_i32_1 = arith.constant 0 : i32
    return %arg0, %c0_i32, %c0_i32_0 : i32, i32, i32
  }
}

</mosaic_0001>

<bundles_post_ra>
// kernel: tpu_custom_call.1
= control target key start
LH: loop header
LB: loop body
LE: loop exit
PB: predicated region body
PF: predicated region fallthrough
CT: control target
= control target key end

     0   :  { %8 = vsyncpa [#allocation5], 0  ;;  %s1064_s0 = inlined_call_operand.vmem [shape: f32[2,4,256], index: 0, kind: input, shape index: {}]   ;;  %s1065_s1 = inlined_call_operand.vmem [shape: f32[4,128], index: 1, kind: input, shape index: {}]   ;;  %s1066_s2 = inlined_call_operand.vmem [shape: f32[128,4], index: 2, kind: input, shape index: {}]   ;;  %s1067_s3 = inlined_call_operand.hbm [shape: f32[2,1,4], index: 3, kind: output, shape index: {}]  }
   0x1   :  { %10 = vsyncpa [#allocation5 + $0x1], 0  ;;  %s881_s12 = smov 0   ;;  %s883_s13 = smov 0  }
   0x2   :  { %s885_s14 = smov 0   ;;  %s887_s15 = smov 0  }
   0x3   :  { %s889_s16 = smov 0   ;;  %s891_s17 = smov 0  }
   0x4 LB: > { %s644_s18 = sadd.s32 4294967295, %s856_s17   ;;  %s645_s19 = sadd.s32 4294967294, %s856_s17   ;;  %s856_s17 = sphi %s891_s17, %s16_s17   ;;  %s852_s16 = sphi %s889_s16, %s1074_s16   ;;  %s848_s15 = sphi %s887_s15, %s1073_s15   ;;  %s844_s14 = sphi %s885_s14, %s1072_s14   ;;  %s840_s13 = sphi %s883_s13, %s1071_s13   ;;  %s836_s12 = sphi %s881_s12, %s1070_s12  }
   0x5   : > { %s28_s20 = sadd.s32 1, %s852_s16  ;;  %s105_s21 = sadd.s32 1, %s844_s14 }
   0x6   : > { %p30_p0 = scmp.ge.s32.totalorder %s28_s20, 2  ;;  %p115_p1 = scmp.ne.s32.totalorder %s844_s14, %s840_s13 }
   0x7   : > { %p116_p2 = scmp.eq.s32.totalorder %s644_s18, 1  ;;  %p121_p3 = scmp.ne.s32.totalorder %s840_s13, %s836_s12 }
   0x8   : > { %s1076_s20 = smov (%p30_p0, %s28_s20), 0  ;;  %p122_p5 = scmp.eq.s32.totalorder %s645_s19, 1 }
   0x9   : > { %p921_p4 = por %p116_p2, %p115_p1  ;;  %s102_s23 = ssub.s32 %s852_s16, %s1076_s20 }
   0xa   : > { %p648_p6 = scmp.ge.s32.totalorder %s856_s17, 1  ;;  %p103_p7 = scmp.eq.s32.totalorder %s102_s23, 0 }
   0xb   : > { %p928_p8 = por %p122_p5, %p121_p3  ;;  %p159_p9 = scmp.lt.s32.totalorder %s856_s17, 3 }
   0xc   : > { %s934_s25 = scalar_select %p103_p7, %s844_s14, %s105_s21  }
   0xd   : > { %p160_p10 = pnand %p648_p6, %p159_p9 }
   0xe   : > { %p187_p11 = scmp.lt.s32.totalorder (!%p160_p10), %s848_s15, 1  ;;  %s184_s4 = sand.u32 (!%p160_p10), 1, %s840_s13  }
   0xf   : > { %163 = sbr.rel (%p160_p10) target bundleno = 620 (0x26c), region = 32  ;;  %s655_s5 = sshll.u32 (!%p160_p10), %s848_s15, 4 }
  0x10   : > { %s185_s6 = scalar_lea.vmem (!%p160_p10), [#allocation4], %s184_s4  ;;  %s1023_s10 = scalar_lea.hbm (!%p160_p10), %s1067_s3, %s655_s5 }
  0x11   : > { %s575_s7 = sshll.u32 (!%p160_p10), %s185_s6, 4  ;;  %s563_s11 = scalar_lea.sflag (!%p160_p10), [#allocation5], %s184_s4  ;;  %s576_s7 = int_to_ptr.vmem [resolvable:$true] %s575_s7 }
  0x12   : > { %s780_s18 = scalar_lea.vmem (!%p160_p10), %s576_s7, 16  ;;  %s860_s19 = smov (!%p160_p10), [#allocation4]  }
  0x13   : > { %p781_p12 = scmp.ne.s32.totalorder (!%p160_p10), %s576_s7, %s780_s18  ;;  %s784_s21 = sshll.u32 (!%p160_p10), %s860_s19, 4  ;;  %s785_s21 = int_to_ptr.vmem [resolvable:$false] %s784_s21 }
  0x14   : > { %s188_s26 = scalar_select %p187_p11, %s848_s15, 1  ;;  %vm200_vm0 = vcmask 1043456   ;;  %v385_v8 = vld [vmem:[%s1065_s1] sm:$0xf]  ;;  %v858_v9 = vmov 0.0   ;;  %vm859_vm1 = vmmov 0   ;;  %v216_v24 = vlaneseq }
  0x15   : > { %678 = vmatprep.subr.mxu0 %v858_v9  ;;  %680 = vmatprep.mubr.msk.f32.mxu0 %vm859_vm1, %v858_v9  ;;  %v479_v10 = vld [vmem:[%s1066_s2 + $0x78] sm:$0xff]  ;;  %v478_v11 = vld [vmem:[%s1066_s2 + $0x70] sm:$0xff]  ;;  %v477_v12 = vld [vmem:[%s1066_s2 + $0x68] sm:$0xff]  ;;  %vm223_vm2 = vcmask 24576   ;;  %vm383_vm3 = vcmask 1040384   ;;  %vm386_vm4 = vcmask 31744   ;;  %p782_p13 = pnand %p781_p12, %p921_p4  ;;  %p787_p1 = scmp.lt.s32.totalorder %s576_s7, %s785_s21 }
  0x16   : > { %s658_s27 = sshll.u32 %s188_s26, 3  ;;  %679 = vmatpush3.msk.msra.mxu0 %vm200_vm0, %v385_v8  ;;  %683 = vmatprep.subr.mxu1 %v858_v9  ;;  %v476_v13 = vld [vmem:[%s1066_s2 + $0x60] sm:$0xff]  ;;  %v475_v14 = vld [vmem:[%s1066_s2 + $0x58] sm:$0xff]  ;;  %v474_v15 = vld [vmem:[%s1066_s2 + $0x50] sm:$0xff]  ;;  %v217_v25 = vand.u32 127, %v216_v24  ;;  %v219_v26 = vshrl.u32 %v216_v24, 7 }
  0x17   : > { %s194_s30 = scalar_lea.vmem %s1064_s0, %s658_s27  ;;  %715 = vmatprep.mubr.msk.f32.mxu1 %vm859_vm1, %v858_v9  ;;  %684 = vmatpush3.msra.mxu1 %v479_v10  ;;  %v473_v16 = vld [vmem:[%s1066_s2 + $0x48] sm:$0xff]  ;;  %v472_v17 = vld [vmem:[%s1066_s2 + $0x40] sm:$0xff]  ;;  %v471_v18 = vld [vmem:[%s1066_s2 + $0x38] sm:$0xff]  ;;  %p783_p0 = pneg %p782_p13 }
  0x18   : > { %v196_v0 = vld [vmem:[%s194_s30] sm:$0xff]  ;;  %685 = vmatprep.subr.mxu1 %v858_v9  ;;  %v470_v19 = vld [vmem:[%s1066_s2 + $0x30] sm:$0xff]  ;;  %v469_v20 = vld [vmem:[%s1066_s2 + $0x28] sm:$0xff]  ;;  %v220_v27 = vsub.s32 %v217_v25, %v219_v26  ;;  %s786_s15 = scalar_lea.vmem %s785_s21, 32 }
  0x19   : > { %v198_v1 = vcombine.high %v196_v0, %v196_v0  ;;  %v201_v2 = vsel %vm200_vm0, %v196_v0, 0.0  ;;  %v206_v4 = vsel %vm200_vm0, %v196_v0, -inf  ;;  %686 = vmatpush3.msra.mxu1 %v478_v11  ;;  %v468_v21 = vld [vmem:[%s1066_s2 + $0x20] sm:$0xff]  ;;  %v467_v22 = vld [vmem:[%s1066_s2 + $0x18] sm:$0xff]  ;;  %v466_v23 = vld [vmem:[%s1066_s2 + $0x10] sm:$0xff]  ;;  %p788_p2 = scmp.lt.s32.totalorder %s786_s15, %s780_s18 }
  0x1a   : > { %687 = vmatprep.subr.mxu1 %v858_v9  ;;  %v465_v36 = vld [vmem:[%s1066_s2 + $0x8] sm:$0xff]  ;;  %v464_v37 = vld [vmem:[%s1066_s2] sm:$0xff] }
  0x1b   : > { %v202_v3 = vsel %vm200_vm0, %v198_v1, 0.0  ;;  %v207_v5 = vsel %vm200_vm0, %v198_v1, -inf  ;;  %688 = vmatpush3.msra.mxu1 %v477_v12  ;;  %p789_p3 = por %p788_p2, %p787_p1 }
  0x1c   : > { %v203_v6 = vadd.f32 %v202_v3, %v201_v2  ;;  %v208_v7 = vmax.f32 %v206_v4, %v207_v5  ;;  %689 = vmatprep.subr.mxu1 %v858_v9 }
  0x1d   : > { %690 = vmatpush3.msra.mxu1 %v476_v13  ;;  %p790_p5 = pnand %p789_p3, %p783_p0 }
  0x1e   : > { %204 = vadd.xlane.f32.xlu0 %v203_v6  ;;  %691 = vmatprep.subr.mxu1 %v858_v9 }
  0x1f   : > { %692 = vmatpush3.msra.mxu1 %v475_v14 }
  0x20   : > { %693 = vmatprep.subr.mxu1 %v858_v9 }
  0x21   : > { %694 = vmatpush3.msra.mxu1 %v474_v15 }
  0x22   : > { %209 = vmax.xlane.f32.xlu0 %v208_v7  ;;  %695 = vmatprep.subr.mxu1 %v858_v9 }
  0x23   : > { %696 = vmatpush3.msra.mxu1 %v473_v16 }
  0x24   : > { %697 = vmatprep.subr.mxu1 %v858_v9 }
  0x25   : > { %698 = vmatpush3.msra.mxu1 %v472_v17 }
  0x26   : > { %699 = vmatprep.subr.mxu1 %v858_v9 }
  0x27   : > { %700 = vmatpush3.msra.mxu1 %v471_v18 }
  0x28   : > { %701 = vmatprep.subr.mxu1 %v858_v9 }
  0x29   : > { %702 = vmatpush3.msra.mxu1 %v470_v19 }
  0x2a   : > { %703 = vmatprep.subr.mxu1 %v858_v9 }
  0x2b   : > { %704 = vmatpush3.msra.mxu1 %v469_v20 }
  0x2c   : > { %705 = vmatprep.subr.mxu1 %v858_v9 }
  0x2d   : > { %706 = vmatpush3.msra.mxu1 %v468_v21 }
  0x2e   : > { %707 = vmatprep.subr.mxu1 %v858_v9 }
  0x2f   : > { %708 = vmatpush3.msra.mxu1 %v467_v22 }
  0x30   : > { %709 = vmatprep.subr.mxu1 %v858_v9 }
  0x31   : > { %710 = vmatpush3.msra.mxu1 %v466_v23 }
  0x32   : > { %711 = vmatprep.subr.mxu1 %v858_v9 }
  0x33   : > { %712 = vmatpush3.msra.mxu1 %v465_v36 }
  0x34   : > { %713 = vmatprep.subr.mxu1 %v858_v9 }
  0x35   : > { %714 = vmatpush3.msra.mxu1 %v464_v37 }
  0xa7   : > { %v205_v28 = vpop.xlane.xlu0 %204 }
  0xa8   : > { %v221_v29 = vrot.slane %v205_v28, %v220_v27 }
  0xaa   : > { %224 = vst.msk [vmem:[#allocation2] sm:$0x1] %vm223_vm2, %v221_v29 }
  0xab   : > { %v210_v30 = vpop.xlane.xlu0 %209 }
  0xac   : > { %v229_v31 = vrot.slane %v210_v30, %v220_v27 }
  0xae   : > { %231 = vst.msk [vmem:[#allocation3] sm:$0x1] %vm223_vm2, %v229_v31 }
  0xb1   : > { %v374_v32 = vld [vmem:[#allocation2] sm:$0x1] }
  0xb2   : > { %v375_v33 = vmul.f32 0.00390625, %v374_v32 }
  0xb5   : > { %v651_v34 = vld [vmem:[#allocation3] ss:$0 sm:$0xff] }
  0xb6   : > { %v384_v35 = vsel %vm383_vm3, %v375_v33, %v651_v34 }
  0xb7   : > { %681 = vmatmul.mubr.msk.f32.vlgmr.msra.gmra.mxu0 %vm386_vm4, %v384_v35 }
 0x177   : > { %v459_v38 = vpop.f32.mrf.mxu0 }
 0x178   : > { %v463_v39 = vmax.f32 %v459_v38, 0.0 }
 0x179   : > { %v682_v40 = vpop.f32.mrf.mxu0 }
 0x17a   : > { %716 = vmatmul.mubr.f32.vlgmr.msra.gmra.mxu1 %v463_v39 }
 0x23a   : > { %v546_v41 = vpop.f32.mrf.mxu1 }
 0x23b   : > { %v551_v42 = vrot.slane %v546_v41, 1 }
 0x23c   : > { %v717_v43 = vpop.f32.mrf.mxu1 }
 0x23d   : > { %v553_v44 = vadd.f32 %v551_v42, %v546_v41 }
 0x23f   : > { %v654_v45 = vmul.f32 -1.442695, %v553_v44 }
 0x241   : > { %776 = vpow2.f32 %v654_v45 }
 0x24e   : > { %v777_v46 = vpop.eup %776 }
 0x24f   : > { %v557_v47 = vadd.f32 1.0, %v777_v46 }
 0x251   : > { %778 = vrcp.f32 %v557_v47 }
 0x25e   : > { %v779_v48 = vpop.eup %778 }
 0x25f   : > { %561 = vst.msk [vmem:[%s185_s6] sm:$0x1] %vm223_vm2, %v779_v48 }
 0x260   : > { %793 = shalt.err (!%p790_p5)
}
 0x261   : > { %s794_s23 = scalar_lea.hbm %s1023_s10, 16  ;;  %s798_s28 = scalar_lea.hbm %s1067_s3, 32 }
 0x262   : > { %p795_p6 = scmp.ne.s32.totalorder %s1023_s10, %s794_s23  ;;  %p799_p10 = scmp.lt.s32.totalorder %s1023_s10, %s1067_s3 }
 0x263   : > { %p800_p11 = scmp.lt.s32.totalorder %s798_s28, %s794_s23 }
 0x264   : > { %p796_p7 = pnand %p795_p6, %p921_p4 }
 0x265   : > { %p801_p12 = por %p800_p11, %p799_p10 }
 0x266   : > { %p797_p9 = pneg %p796_p7 }
 0x268   : > { %p802_p13 = pnand %p801_p12, %p797_p9 }
 0x26a   : > { %805 = shalt.err (!%p802_p13)
}
 0x26b   : > { %718 = dma.vmem_to_hbm [thread:$0]  (%p921_p4), %s576_s7, 16, %s1023_s10, %s563_s11  }
 0x26c PF: > { %p724_p0 = scmp.ge.s32.totalorder %s856_s17, 2  ;;  %s587_s4 = sand.u32 1, %s836_s12  }
 0x26d   : > { %s588_s5 = scalar_lea.sflag [#allocation5], %s587_s4 }
 0x26e   : > { %p721_p1 = pnand %p724_p0, %p928_p8 }
 0x270   : > { %p722_p2 = pneg %p721_p1 }
 0x272   : > { %831 = dma.done.wait (%p722_p2), %s588_s5, 16  }
 0x273   : > { %833 = vsyncadd (%p722_p2), %s588_s5, 4294967280  ;;  %s16_s17 = sadd.s32 1, %s856_s17   ;;  %s1070_s12 = smov %s840_s13 }
 0x274   : > { %p13_p3 = scmp.ge.s32.totalorder %s16_s17, 4   ;;  %s1071_s13 = smov %s844_s14 }
 0x275   : > { %s1072_s14 = smov %s934_s25  ;;  %s1073_s15 = smov %s852_s16 }
 0x276   : > { %s1074_s16 = smov %s1076_s20  ;;  %15 = sbr.rel (!%p13_p3) target bundleno = 4 (0x4), region = 79 }
 0x27b   :  { %592 = vsyncpa [#allocation5], 1 }
 0x27c   :  { %594 = vsyncpa [#allocation5 + $0x1], 1 }

</bundles_post_ra>
